<compile_context>
chip_gen: v5e
topology: v5e:2x2
jax: 0.10.0
libtpu: 0.0.40
codegen_flags: <defaults>
</compile_context>

<pallas_src>
import functools

import jax
import jax.numpy as jnp
import numpy as np
from jax import lax
from jax.experimental import pallas as pl
from jax.experimental.pallas import tpu as pltpu


def _ca_kernel(l_total, inv_l, needs_mask, nchunks, tile_l,
               x_ref, w1_ref, b1_ref, w2_ref, b2_ref,
               out_ref, sum_sc, max_sc):
    """One batch row, one length tile.

    x_ref   : (1, C, TILE_L)  input tile (channels on sublanes, length on lanes)
    w1_ref  : (H, C)   squeeze weight     b1_ref : (H, 1)
    w2_ref  : (C, H)   excite weight      b2_ref : (C, 1)
    out_ref : (1, C, 1) attention output for this batch row
    sum_sc  : (C, 128) lane-wise running sum over length
    max_sc  : (C, 128) lane-wise running max over length
    """
    lt = pl.program_id(1)

    @pl.when(lt == 0)
    def _init():
        sum_sc[...] = jnp.zeros_like(sum_sc)
        max_sc[...] = jnp.full_like(max_sc, -jnp.inf)

    def _accumulate(mask_padding):
        # Fold this tile into the (C, 128) lane accumulators with pure VPU
        # add/max; cross-lane reduction is deferred to the finalize branch.
        acc_s = sum_sc[...]
        acc_m = max_sc[...]
        for j in range(nchunks):
            chunk = x_ref[0, :, pl.ds(j * 128, 128)].astype(jnp.float32)  # (C, 128)
            acc_s = acc_s + chunk          # zero padding never perturbs the sum
            if mask_padding:
                pos = (lt * tile_l + j * 128
                       + lax.broadcasted_iota(jnp.int32, (1, 128), 1))
                chunk = jnp.where(pos < l_total, chunk, -jnp.inf)
            acc_m = jnp.maximum(acc_m, chunk)
        sum_sc[...] = acc_s
        max_sc[...] = acc_m

    if needs_mask:
        last = pl.num_programs(1) - 1

        @pl.when(lt < last)          # interior tiles: no masking VALU work at all
        def _plain():
            _accumulate(False)

        @pl.when(lt == last)         # padding only ever lives in the last tile
        def _masked():
            _accumulate(True)
    else:
        _accumulate(False)

    @pl.when(lt == pl.num_programs(1) - 1)
    def _finalize():
        # One cross-lane (XLU) reduction per batch row.
        sum_c = jnp.sum(sum_sc[...], axis=1, keepdims=True)   # (C, 1)
        max_c = jnp.max(max_sc[...], axis=1, keepdims=True)   # (C, 1)
        avg = sum_c * inv_l
        pooled = jnp.concatenate([avg, max_c], axis=1)         # (C, 2)
        # Shared SE MLP on both pooled vectors at once (one pair of matmuls).
        h = jnp.dot(w1_ref[...], pooled,
                    preferred_element_type=jnp.float32) + b1_ref[...]   # (H, 2)
        h = jnp.maximum(h, 0.0)
        s = jnp.dot(w2_ref[...], h,
                    preferred_element_type=jnp.float32) + b2_ref[...]   # (C, 2)
        att = jax.nn.sigmoid(s[:, 0:1] + s[:, 1:2])                     # (C, 1)
        out_ref[...] = att[None]                                        # (1, C, 1)


def channel_attention(x, p, *, tile_l=1024):
    """x: (N, C, L) f32 or bf16 (PyTorch NCL). Returns (N, C, 1) = sigmoid(se(avg)+se(max))."""
    n, c, length = x.shape
    hidden = p["w1"].shape[0]

    # Adaptive length tiling: lane-align L, then split into the fewest tiles of
    # size <= tile_l (multiple of 128) so padding never exceeds one lane group
    # beyond alignment even when L is short.
    lanes = pl.cdiv(length, 128)
    max_chunks = max(1, tile_l // 128)
    num_lt = pl.cdiv(lanes, max_chunks)
    nchunks = pl.cdiv(lanes, num_lt)
    tile_l_eff = nchunks * 128
    l_pad = num_lt * tile_l_eff
    needs_mask = (l_pad != length)
    if needs_mask:
        x = jnp.pad(x, ((0, 0), (0, 0), (0, l_pad - length)))

    # Conv1d(k=1) weights as plain matrices / column biases.
    w1 = p["w1"].reshape(hidden, c).astype(jnp.float32)   # (H, C)
    b1 = p["b1"].reshape(hidden, 1).astype(jnp.float32)   # (H, 1)
    w2 = p["w2"].reshape(c, hidden).astype(jnp.float32)   # (C, H)
    b2 = p["b2"].reshape(c, 1).astype(jnp.float32)        # (C, 1)

    kernel = functools.partial(_ca_kernel, length, 1.0 / length, needs_mask,
                               nchunks, tile_l_eff)

    itemsize = jnp.dtype(x.dtype).itemsize
    cost = pl.CostEstimate(
        flops=int(8 * n * hidden * c),
        transcendentals=int(n * c),
        bytes_accessed=int(n * c * l_pad * itemsize
                           + 4 * (w1.size + b1.size + w2.size + b2.size)
                           + 4 * n * c),
    )

    # Bump scoped VMEM only if the double-buffered x tile footprint would bind
    # (large C with the recommended big tiles); cap well under v7x's 64 MiB.
    x_buf_bytes = 2 * c * tile_l_eff * itemsize
    vmem_limit = None
    if x_buf_bytes > (24 << 20):
        vmem_limit = min(x_buf_bytes + (8 << 20), 56 << 20)

    out = pl.pallas_call(
        kernel,
        out_shape=jax.ShapeDtypeStruct((n, c, 1), jnp.float32),
        grid_spec=pltpu.PrefetchScalarGridSpec(
            num_scalar_prefetch=0,
            grid=(n, num_lt),
            in_specs=[
                pl.BlockSpec((1, c, tile_l_eff), lambda i, lt: (i, 0, lt)),  # x tiles (pipelined)
                pl.BlockSpec((hidden, c), lambda i, lt: (0, 0)),             # w1 (resident)
                pl.BlockSpec((hidden, 1), lambda i, lt: (0, 0)),             # b1
                pl.BlockSpec((c, hidden), lambda i, lt: (0, 0)),             # w2
                pl.BlockSpec((c, 1), lambda i, lt: (0, 0)),                  # b2
            ],
            out_specs=pl.BlockSpec((1, c, 1), lambda i, lt: (i, 0, 0)),
            scratch_shapes=[
                pltpu.VMEM((c, 128), jnp.float32),   # lane-wise running sum
                pltpu.VMEM((c, 128), jnp.float32),   # lane-wise running max
            ],
        ),
        compiler_params=pltpu.CompilerParams(
            dimension_semantics=("parallel", "arbitrary"),
            vmem_limit_bytes=vmem_limit,
        ),
        cost_estimate=cost,
    )(x, w1, b1, w2, b2)
    return out


def reference(x, p):
    """Pure-JAX reference reproducing the PyTorch ChannelAttention forward."""
    n, c, _ = x.shape
    hidden = p["w1"].shape[0]
    w1 = p["w1"].reshape(hidden, c)
    w2 = p["w2"].reshape(c, hidden)
    avg = jnp.mean(x.astype(jnp.float32), axis=2)   # (N, C)
    mx = jnp.max(x.astype(jnp.float32), axis=2)     # (N, C)

    def se(v):
        h = jnp.maximum(
            jnp.dot(v, w1.T, precision=lax.Precision.HIGHEST) + p["b1"], 0.0)
        return jnp.dot(h, w2.T, precision=lax.Precision.HIGHEST) + p["b2"]

    att = jax.nn.sigmoid(se(avg) + se(mx))           # (N, C)
    return att[:, :, None]                           # (N, C, 1)


if __name__ == "__main__":
    N, C, L = 2, 64, 500          # L not a multiple of 128 -> exercises the last-tile max mask
    REDUCTION = 16
    hidden = C // REDUCTION       # 4

    key = jax.random.PRNGKey(0)
    ks = jax.random.split(key, 5)
    p = {
        "w1": jax.random.normal(ks[0], (hidden, C, 1), jnp.float32) * 0.2,  # Conv1d(C, C//r, 1)
        "b1": jax.random.normal(ks[1], (hidden,), jnp.float32) * 0.1,
        "w2": jax.random.normal(ks[2], (C, hidden, 1), jnp.float32) * 0.2,  # Conv1d(C//r, C, 1)
        "b2": jax.random.normal(ks[3], (C,), jnp.float32) * 0.1,
    }
    x = jax.random.normal(ks[4], (N, C, L), jnp.float32)

    ref = jax.block_until_ready(reference(x, p))

    # Default big tile: single length tile per row (masked path + finalize).
    out = jax.block_until_ready(channel_attention(x, p))
    assert out.shape == (N, C, 1)
    np.testing.assert_allclose(np.asarray(out), np.asarray(ref), rtol=2e-3, atol=2e-3)

    # Small tile: multi-tile accumulation path (interior plain tiles + masked last tile).
    out_small = jax.block_until_ready(channel_attention(x, p, tile_l=128))
    np.testing.assert_allclose(np.asarray(out_small), np.asarray(ref), rtol=2e-3, atol=2e-3)

    print("KERNEL_OK")
</pallas_src>

<mosaic_0001>
module attributes {stable_mosaic.version = 11 : i64} {
  func.func @_ca_kernel(%arg0: i32, %arg1: i32, %arg2: memref<1x64x512xf32, #tpu.memory_space<vmem>>, %arg3: memref<4x64xf32, #tpu.memory_space<vmem>>, %arg4: memref<4x1xf32, #tpu.memory_space<vmem>>, %arg5: memref<64x4xf32, #tpu.memory_space<vmem>>, %arg6: memref<64x1xf32, #tpu.memory_space<vmem>>, %arg7: memref<1x64x1xf32, #tpu.memory_space<vmem>>, %arg8: memref<64x128xf32, #tpu.memory_space<vmem>>, %arg9: memref<64x128xf32, #tpu.memory_space<vmem>>) attributes {dimension_semantics = [#tpu.dimension_semantics<parallel>, #tpu.dimension_semantics<arbitrary>], iteration_bounds = array<i64: 2, 1>, scalar_prefetch = 0 : i64, scratch_operands = 2 : i64, tpu.core_type = #tpu.core_type<tc>, window_params = [{transform_indices = @transform_0, window_bounds = array<i64: 1, 64, 512>}, {pipeline_mode = #tpu.pipeline_mode<synchronous>, transform_indices = @transform_1, window_bounds = array<i64: 4, 64>}, {pipeline_mode = #tpu.pipeline_mode<synchronous>, transform_indices = @transform_2, window_bounds = array<i64: 4, 1>}, {pipeline_mode = #tpu.pipeline_mode<synchronous>, transform_indices = @transform_3, window_bounds = array<i64: 64, 4>}, {pipeline_mode = #tpu.pipeline_mode<synchronous>, transform_indices = @transform_4, window_bounds = array<i64: 64, 1>}, {transform_indices = @transform_5, window_bounds = array<i64: 1, 64, 1>}]} {
    %c0_i32 = arith.constant 0 : i32
    %0 = arith.cmpi eq, %arg1, %c0_i32 : i32
    %1 = arith.extui %0 : i1 to i32
    %c0_i32_0 = arith.constant 0 : i32
    %2 = arith.cmpi ne, %1, %c0_i32_0 : i32
    scf.if %2 {
      %cst = arith.constant 0.000000e+00 : f32
      %12 = vector.broadcast %cst : f32 to vector<64x128xf32>
      %c0 = arith.constant 0 : index
      %c0_7 = arith.constant 0 : index
      %13 = vector.load %arg8[%c0, %c0_7] : memref<64x128xf32, #tpu.memory_space<vmem>>, vector<64x128xf32>
      tpu.vector_store %arg8[%c0, %c0_7], %12 {strides = array<i32>} : memref<64x128xf32, #tpu.memory_space<vmem>>, vector<64x128xf32>,
      %cst_8 = arith.constant 0xFF800000 : f32
      %14 = vector.broadcast %cst_8 : f32 to vector<64x128xf32>
      %c0_9 = arith.constant 0 : index
      %c0_10 = arith.constant 0 : index
      %15 = vector.load %arg9[%c0_9, %c0_10] : memref<64x128xf32, #tpu.memory_space<vmem>>, vector<64x128xf32>
      tpu.vector_store %arg9[%c0_9, %c0_10], %14 {strides = array<i32>} : memref<64x128xf32, #tpu.memory_space<vmem>>, vector<64x128xf32>,
    } else {
    }
    %c0_i32_1 = arith.constant 0 : i32
    %3 = arith.cmpi slt, %arg1, %c0_i32_1 : i32
    %4 = arith.extui %3 : i1 to i32
    %c0_i32_2 = arith.constant 0 : i32
    %5 = arith.cmpi ne, %4, %c0_i32_2 : i32
    scf.if %5 {
      %c0 = arith.constant 0 : index
      %c0_7 = arith.constant 0 : index
      %12 = vector.load %arg8[%c0, %c0_7] : memref<64x128xf32, #tpu.memory_space<vmem>>, vector<64x128xf32>
      %c0_8 = arith.constant 0 : index
      %c0_9 = arith.constant 0 : index
      %13 = vector.load %arg9[%c0_8, %c0_9] : memref<64x128xf32, #tpu.memory_space<vmem>>, vector<64x128xf32>
      %c0_10 = arith.constant 0 : index
      %c0_11 = arith.constant 0 : index
      %c0_12 = arith.constant 0 : index
      %14 = vector.load %arg2[%c0_10, %c0_11, %c0_12] : memref<1x64x512xf32, #tpu.memory_space<vmem>>, vector<1x64x128xf32>
      %15 = vector.shape_cast %14 : vector<1x64x128xf32> to vector<64x128xf32>
      %16 = arith.addf %12, %15 : vector<64x128xf32>
      %17 = arith.maximumf %13, %15 : vector<64x128xf32>
      %c0_13 = arith.constant 0 : index
      %c0_14 = arith.constant 0 : index
      %c128 = arith.constant 128 : index
      %18 = vector.load %arg2[%c0_13, %c0_14, %c128] : memref<1x64x512xf32, #tpu.memory_space<vmem>>, vector<1x64x128xf32>
      %19 = vector.shape_cast %18 : vector<1x64x128xf32> to vector<64x128xf32>
      %20 = arith.addf %16, %19 : vector<64x128xf32>
      %21 = arith.maximumf %17, %19 : vector<64x128xf32>
      %c0_15 = arith.constant 0 : index
      %c0_16 = arith.constant 0 : index
      %c256 = arith.constant 256 : index
      %22 = vector.load %arg2[%c0_15, %c0_16, %c256] : memref<1x64x512xf32, #tpu.memory_space<vmem>>, vector<1x64x128xf32>
      %23 = vector.shape_cast %22 : vector<1x64x128xf32> to vector<64x128xf32>
      %24 = arith.addf %20, %23 : vector<64x128xf32>
      %25 = arith.maximumf %21, %23 : vector<64x128xf32>
      %c0_17 = arith.constant 0 : index
      %c0_18 = arith.constant 0 : index
      %c384 = arith.constant 384 : index
      %26 = vector.load %arg2[%c0_17, %c0_18, %c384] : memref<1x64x512xf32, #tpu.memory_space<vmem>>, vector<1x64x128xf32>
      %27 = vector.shape_cast %26 : vector<1x64x128xf32> to vector<64x128xf32>
      %28 = arith.addf %24, %27 : vector<64x128xf32>
      %29 = arith.maximumf %25, %27 : vector<64x128xf32>
      %c0_19 = arith.constant 0 : index
      %c0_20 = arith.constant 0 : index
      %30 = vector.load %arg8[%c0_19, %c0_20] : memref<64x128xf32, #tpu.memory_space<vmem>>, vector<64x128xf32>
      tpu.vector_store %arg8[%c0_19, %c0_20], %28 {strides = array<i32>} : memref<64x128xf32, #tpu.memory_space<vmem>>, vector<64x128xf32>,
      %c0_21 = arith.constant 0 : index
      %c0_22 = arith.constant 0 : index
      %31 = vector.load %arg9[%c0_21, %c0_22] : memref<64x128xf32, #tpu.memory_space<vmem>>, vector<64x128xf32>
      tpu.vector_store %arg9[%c0_21, %c0_22], %29 {strides = array<i32>} : memref<64x128xf32, #tpu.memory_space<vmem>>, vector<64x128xf32>,
    } else {
    }
    %c0_i32_3 = arith.constant 0 : i32
    %6 = arith.cmpi eq, %arg1, %c0_i32_3 : i32
    %7 = arith.extui %6 : i1 to i32
    %c0_i32_4 = arith.constant 0 : i32
    %8 = arith.cmpi ne, %7, %c0_i32_4 : i32
    scf.if %8 {
      %c0 = arith.constant 0 : index
      %c0_7 = arith.constant 0 : index
      %12 = vector.load %arg8[%c0, %c0_7] : memref<64x128xf32, #tpu.memory_space<vmem>>, vector<64x128xf32>
      %c0_8 = arith.constant 0 : index
      %c0_9 = arith.constant 0 : index
      %13 = vector.load %arg9[%c0_8, %c0_9] : memref<64x128xf32, #tpu.memory_space<vmem>>, vector<64x128xf32>
      %c0_10 = arith.constant 0 : index
      %c0_11 = arith.constant 0 : index
      %c0_12 = arith.constant 0 : index
      %14 = vector.load %arg2[%c0_10, %c0_11, %c0_12] : memref<1x64x512xf32, #tpu.memory_space<vmem>>, vector<1x64x128xf32>
      %15 = vector.shape_cast %14 : vector<1x64x128xf32> to vector<64x128xf32>
      %16 = arith.addf %12, %15 : vector<64x128xf32>
      %c512_i32 = arith.constant 512 : i32
      %17 = arith.muli %arg1, %c512_i32 : i32
      %c0_i32_13 = arith.constant 0 : i32
      %18 = arith.addi %17, %c0_i32_13 : i32
      %19 = tpu.iota {dimensions = array<i32: 1>} : vector<1x128xi32>
      %20 = vector.broadcast %18 : i32 to vector<1x128xi32>
      %21 = arith.addi %20, %19 : vector<1x128xi32>
      %c500_i32 = arith.constant 500 : i32
      %22 = vector.broadcast %c500_i32 : i32 to vector<1x128xi32>
      %23 = arith.cmpi slt, %21, %22 : vector<1x128xi32>
      %cst = arith.constant 0xFF800000 : f32
      %24 = vector.shape_cast %23 : vector<1x128xi1> to vector<1x128xi1>
      %25 = vector.broadcast %24 : vector<1x128xi1> to vector<64x128xi1>
      %26 = vector.broadcast %cst : f32 to vector<64x128xf32>
      %27 = arith.select %25, %15, %26 : vector<64x128xi1>, vector<64x128xf32>
      %28 = arith.maximumf %13, %27 : vector<64x128xf32>
      %c0_14 = arith.constant 0 : index
      %c0_15 = arith.constant 0 : index
      %c128 = arith.constant 128 : index
      %29 = vector.load %arg2[%c0_14, %c0_15, %c128] : memref<1x64x512xf32, #tpu.memory_space<vmem>>, vector<1x64x128xf32>
      %30 = vector.shape_cast %29 : vector<1x64x128xf32> to vector<64x128xf32>
      %31 = arith.addf %16, %30 : vector<64x128xf32>
      %c512_i32_16 = arith.constant 512 : i32
      %32 = arith.muli %arg1, %c512_i32_16 : i32
      %c128_i32 = arith.constant 128 : i32
      %33 = arith.addi %32, %c128_i32 : i32
      %34 = tpu.iota {dimensions = array<i32: 1>} : vector<1x128xi32>
      %35 = vector.broadcast %33 : i32 to vector<1x128xi32>
      %36 = arith.addi %35, %34 : vector<1x128xi32>
      %c500_i32_17 = arith.constant 500 : i32
      %37 = vector.broadcast %c500_i32_17 : i32 to vector<1x128xi32>
      %38 = arith.cmpi slt, %36, %37 : vector<1x128xi32>
      %cst_18 = arith.constant 0xFF800000 : f32
      %39 = vector.shape_cast %38 : vector<1x128xi1> to vector<1x128xi1>
      %40 = vector.broadcast %39 : vector<1x128xi1> to vector<64x128xi1>
      %41 = vector.broadcast %cst_18 : f32 to vector<64x128xf32>
      %42 = arith.select %40, %30, %41 : vector<64x128xi1>, vector<64x128xf32>
      %43 = arith.maximumf %28, %42 : vector<64x128xf32>
      %c0_19 = arith.constant 0 : index
      %c0_20 = arith.constant 0 : index
      %c256 = arith.constant 256 : index
      %44 = vector.load %arg2[%c0_19, %c0_20, %c256] : memref<1x64x512xf32, #tpu.memory_space<vmem>>, vector<1x64x128xf32>
      %45 = vector.shape_cast %44 : vector<1x64x128xf32> to vector<64x128xf32>
      %46 = arith.addf %31, %45 : vector<64x128xf32>
      %c512_i32_21 = arith.constant 512 : i32
      %47 = arith.muli %arg1, %c512_i32_21 : i32
      %c256_i32 = arith.constant 256 : i32
      %48 = arith.addi %47, %c256_i32 : i32
      %49 = tpu.iota {dimensions = array<i32: 1>} : vector<1x128xi32>
      %50 = vector.broadcast %48 : i32 to vector<1x128xi32>
      %51 = arith.addi %50, %49 : vector<1x128xi32>
      %c500_i32_22 = arith.constant 500 : i32
      %52 = vector.broadcast %c500_i32_22 : i32 to vector<1x128xi32>
      %53 = arith.cmpi slt, %51, %52 : vector<1x128xi32>
      %cst_23 = arith.constant 0xFF800000 : f32
      %54 = vector.shape_cast %53 : vector<1x128xi1> to vector<1x128xi1>
      %55 = vector.broadcast %54 : vector<1x128xi1> to vector<64x128xi1>
      %56 = vector.broadcast %cst_23 : f32 to vector<64x128xf32>
      %57 = arith.select %55, %45, %56 : vector<64x128xi1>, vector<64x128xf32>
      %58 = arith.maximumf %43, %57 : vector<64x128xf32>
      %c0_24 = arith.constant 0 : index
      %c0_25 = arith.constant 0 : index
      %c384 = arith.constant 384 : index
      %59 = vector.load %arg2[%c0_24, %c0_25, %c384] : memref<1x64x512xf32, #tpu.memory_space<vmem>>, vector<1x64x128xf32>
      %60 = vector.shape_cast %59 : vector<1x64x128xf32> to vector<64x128xf32>
      %61 = arith.addf %46, %60 : vector<64x128xf32>
      %c512_i32_26 = arith.constant 512 : i32
      %62 = arith.muli %arg1, %c512_i32_26 : i32
      %c384_i32 = arith.constant 384 : i32
      %63 = arith.addi %62, %c384_i32 : i32
      %64 = tpu.iota {dimensions = array<i32: 1>} : vector<1x128xi32>
      %65 = vector.broadcast %63 : i32 to vector<1x128xi32>
      %66 = arith.addi %65, %64 : vector<1x128xi32>
      %c500_i32_27 = arith.constant 500 : i32
      %67 = vector.broadcast %c500_i32_27 : i32 to vector<1x128xi32>
      %68 = arith.cmpi slt, %66, %67 : vector<1x128xi32>
      %cst_28 = arith.constant 0xFF800000 : f32
      %69 = vector.shape_cast %68 : vector<1x128xi1> to vector<1x128xi1>
      %70 = vector.broadcast %69 : vector<1x128xi1> to vector<64x128xi1>
      %71 = vector.broadcast %cst_28 : f32 to vector<64x128xf32>
      %72 = arith.select %70, %60, %71 : vector<64x128xi1>, vector<64x128xf32>
      %73 = arith.maximumf %58, %72 : vector<64x128xf32>
      %c0_29 = arith.constant 0 : index
      %c0_30 = arith.constant 0 : index
      %74 = vector.load %arg8[%c0_29, %c0_30] : memref<64x128xf32, #tpu.memory_space<vmem>>, vector<64x128xf32>
      tpu.vector_store %arg8[%c0_29, %c0_30], %61 {strides = array<i32>} : memref<64x128xf32, #tpu.memory_space<vmem>>, vector<64x128xf32>,
      %c0_31 = arith.constant 0 : index
      %c0_32 = arith.constant 0 : index
      %75 = vector.load %arg9[%c0_31, %c0_32] : memref<64x128xf32, #tpu.memory_space<vmem>>, vector<64x128xf32>
      tpu.vector_store %arg9[%c0_31, %c0_32], %73 {strides = array<i32>} : memref<64x128xf32, #tpu.memory_space<vmem>>, vector<64x128xf32>,
    } else {
    }
    %c0_i32_5 = arith.constant 0 : i32
    %9 = arith.cmpi eq, %arg1, %c0_i32_5 : i32
    %10 = arith.extui %9 : i1 to i32
    %c0_i32_6 = arith.constant 0 : i32
    %11 = arith.cmpi ne, %10, %c0_i32_6 : i32
    scf.if %11 {
      %c0 = arith.constant 0 : index
      %c0_7 = arith.constant 0 : index
      %12 = vector.load %arg8[%c0, %c0_7] : memref<64x128xf32, #tpu.memory_space<vmem>>, vector<64x128xf32>
      %cst = arith.constant dense<0.000000e+00> : vector<64xf32>
      %13 = vector.multi_reduction <add>, %12, %cst [1] : vector<64x128xf32> to vector<64xf32>
      %14 = vector.shape_cast %13 : vector<64xf32> to vector<64x1xf32>
      %c0_8 = arith.constant 0 : index
      %c0_9 = arith.constant 0 : index
      %15 = vector.load %arg9[%c0_8, %c0_9] : memref<64x128xf32, #tpu.memory_space<vmem>>, vector<64x128xf32>
      %cst_10 = arith.constant dense<0xFF800000> : vector<64xf32>
      %16 = vector.multi_reduction <maximumf>, %15, %cst_10 [1] : vector<64x128xf32> to vector<64xf32>
      %17 = vector.shape_cast %16 : vector<64xf32> to vector<64x1xf32>
      %cst_11 = arith.constant 2.000000e-03 : f32
      %18 = vector.broadcast %cst_11 : f32 to vector<64x1xf32>
      %19 = arith.mulf %14, %18 : vector<64x1xf32>
      %20 = tpu.concatenate %19, %17 in 1 : vector<64x1xf32>, vector<64x1xf32> -> vector<64x2xf32>
      %c0_12 = arith.constant 0 : index
      %c0_13 = arith.constant 0 : index
      %21 = vector.load %arg3[%c0_12, %c0_13] : memref<4x64xf32, #tpu.memory_space<vmem>>, vector<4x64xf32>
      %cst_14 = arith.constant dense<0.000000e+00> : vector<4x2xf32>
      %22 = tpu.matmul %21, %20, %cst_14 {dimension_numbers = #tpu.dot_dimension_numbers<[1], [0], [0], [1], [0, 0, 1, 1], [], []>} : vector<4x64xf32>, vector<64x2xf32>, vector<4x2xf32> -> vector<4x2xf32>
      %c0_15 = arith.constant 0 : index
      %c0_16 = arith.constant 0 : index
      %23 = vector.load %arg4[%c0_15, %c0_16] : memref<4x1xf32, #tpu.memory_space<vmem>>, vector<4x1xf32>
      %24 = vector.broadcast %23 : vector<4x1xf32> to vector<4x2xf32>
      %25 = arith.addf %22, %24 : vector<4x2xf32>
      %cst_17 = arith.constant 0.000000e+00 : f32
      %26 = vector.broadcast %cst_17 : f32 to vector<4x2xf32>
      %27 = arith.maximumf %25, %26 : vector<4x2xf32>
      %c0_18 = arith.constant 0 : index
      %c0_19 = arith.constant 0 : index
      %28 = vector.load %arg5[%c0_18, %c0_19] : memref<64x4xf32, #tpu.memory_space<vmem>>, vector<64x4xf32>
      %cst_20 = arith.constant dense<0.000000e+00> : vector<64x2xf32>
      %29 = tpu.matmul %28, %27, %cst_20 {dimension_numbers = #tpu.dot_dimension_numbers<[1], [0], [0], [1], [0, 0, 1, 1], [], []>} : vector<64x4xf32>, vector<4x2xf32>, vector<64x2xf32> -> vector<64x2xf32>
      %c0_21 = arith.constant 0 : index
      %c0_22 = arith.constant 0 : index
      %30 = vector.load %arg6[%c0_21, %c0_22] : memref<64x1xf32, #tpu.memory_space<vmem>>, vector<64x1xf32>
      %31 = vector.broadcast %30 : vector<64x1xf32> to vector<64x2xf32>
      %32 = arith.addf %29, %31 : vector<64x2xf32>
      %33 = vector.extract_strided_slice %32 {offsets = [0, 0], sizes = [64, 1], strides = [1, 1]} : vector<64x2xf32> to vector<64x1xf32>
      %34 = vector.extract_strided_slice %32 {offsets = [0, 1], sizes = [64, 1], strides = [1, 1]} : vector<64x2xf32> to vector<64x1xf32>
      %35 = arith.addf %33, %34 : vector<64x1xf32>
      %36 = arith.negf %35 : vector<64x1xf32>
      %37 = math.exp %36 : vector<64x1xf32>
      %cst_23 = arith.constant 1.000000e+00 : f32
      %38 = vector.broadcast %cst_23 : f32 to vector<64x1xf32>
      %39 = arith.addf %38, %37 : vector<64x1xf32>
      %40 = arith.divf %38, %39 : vector<64x1xf32>
      %41 = vector.shape_cast %40 : vector<64x1xf32> to vector<1x64x1xf32>
      %c0_24 = arith.constant 0 : index
      %c0_25 = arith.constant 0 : index
      %c0_26 = arith.constant 0 : index
      %42 = vector.load %arg7[%c0_24, %c0_25, %c0_26] : memref<1x64x1xf32, #tpu.memory_space<vmem>>, vector<1x64x1xf32>
      tpu.vector_store %arg7[%c0_24, %c0_25, %c0_26], %41 {strides = array<i32>} : memref<1x64x1xf32, #tpu.memory_space<vmem>>, vector<1x64x1xf32>,
    } else {
    }
    return
  }
  func.func @transform_0(%arg0: i32, %arg1: i32) -> (i32, i32, i32) {
    %c0_i32 = arith.constant 0 : i32
    %c0_i32_0 = arith.constant 0 : i32
    return %arg0, %c0_i32, %arg1 : i32, i32, i32
  }
  func.func @transform_1(%arg0: i32, %arg1: i32) -> (i32, i32) {
    %c0_i32 = arith.constant 0 : i32
    %c0_i32_0 = arith.constant 0 : i32
    %c0_i32_1 = arith.constant 0 : i32
    return %c0_i32, %c0_i32_0 : i32, i32
  }
  func.func @transform_2(%arg0: i32, %arg1: i32) -> (i32, i32) {
    %c0_i32 = arith.constant 0 : i32
    %c0_i32_0 = arith.constant 0 : i32
    %c0_i32_1 = arith.constant 0 : i32
    return %c0_i32, %c0_i32_0 : i32, i32
  }
  func.func @transform_3(%arg0: i32, %arg1: i32) -> (i32, i32) {
    %c0_i32 = arith.constant 0 : i32
    %c0_i32_0 = arith.constant 0 : i32
    %c0_i32_1 = arith.constant 0 : i32
    return %c0_i32, %c0_i32_0 : i32, i32
  }
  func.func @transform_4(%arg0: i32, %arg1: i32) -> (i32, i32) {
    %c0_i32 = arith.constant 0 : i32
    %c0_i32_0 = arith.constant 0 : i32
    %c0_i32_1 = arith.constant 0 : i32
    return %c0_i32, %c0_i32_0 : i32, i32
  }
  func.func @transform_5(%arg0: i32, %arg1: i32) -> (i32, i32, i32) {
    %c0_i32 = arith.constant 0 : i32
    %c0_i32_0 = arith.constant 0 : i32
    %c0_i32_1 = arith.constant 0 : i32
    return %arg0, %c0_i32, %c0_i32_0 : i32, i32, i32
  }
}

</mosaic_0001>

<bundles_post_ra>
// kernel: tpu_custom_call.1
= control target key start
LH: loop header
LB: loop body
LE: loop exit
PB: predicated region body
PF: predicated region fallthrough
CT: control target
= control target key end

     0   :  { %10 = vsyncpa [#allocation5], 0  ;;  %s1599_s0 = inlined_call_operand.hbm [shape: f32[2,64,512], index: 0, kind: input, shape index: {}]   ;;  %s1600_s1 = inlined_call_operand.vmem [shape: f32[4,64], index: 1, kind: input, shape index: {}]   ;;  %s1601_s2 = inlined_call_operand.vmem [shape: f32[4,1], index: 2, kind: input, shape index: {}]   ;;  %s1602_s3 = inlined_call_operand.vmem [shape: f32[64,4], index: 3, kind: input, shape index: {}]   ;;  %s1603_s4 = inlined_call_operand.vmem [shape: f32[64,1], index: 4, kind: input, shape index: {}]   ;;  %s1604_s5 = inlined_call_operand.vmem [shape: f32[2,64,1], index: 5, kind: output, shape index: {}]  }
   0x1   :  { %12 = vsyncpa [#allocation5 + $0x1], 0  ;;  %s1351_s18 = smov 0   ;;  %s1353_s19 = smov 0  }
   0x2   :  { %s1355_s20 = smov 0   ;;  %s1357_s21 = smov 0  }
   0x3   :  { %s1359_s22 = smov 0   ;;  %s1361_s23 = smov 0  }
   0x4 LB: > { %s1106_s24 = sadd.s32 4294967295, %s1315_s23   ;;  %s30_s25 = sadd.s32 1, %s1311_s22  ;;  %s1315_s23 = sphi %s1361_s23, %s18_s23   ;;  %s1311_s22 = sphi %s1359_s22, %s1611_s22   ;;  %s1307_s21 = sphi %s1357_s21, %s1610_s21   ;;  %s1303_s20 = sphi %s1355_s20, %s1609_s20   ;;  %s1299_s19 = sphi %s1353_s19, %s1608_s19   ;;  %s1295_s18 = sphi %s1351_s18, %s1607_s18  }
   0x5   : > { %p32_p0 = scmp.ge.s32.totalorder %s30_s25, 2  ;;  %s39_s26 = sadd.s32 1, %s1303_s20 }
   0x6   : > { %p46_p1 = scmp.ne.s32.totalorder %s1303_s20, %s1299_s19  ;;  %p47_p2 = scmp.eq.s32.totalorder %s1315_s23, 0 }
   0x7   : > { %s1613_s25 = smov (%p32_p0, %s30_s25), 0  ;;  %p52_p4 = scmp.ne.s32.totalorder %s1299_s19, %s1295_s18 }
   0x8   : > { %p1387_p3 = por %p47_p2, %p46_p1  ;;  %s34_s28 = ssub.s32 %s1311_s22, %s1613_s25 }
   0x9   : > { %p53_p5 = scmp.eq.s32.totalorder %s1106_s24, 0  ;;  %p37_p6 = scmp.eq.s32.totalorder %s34_s28, 0 }
   0xa   : > { %p1147_p8 = scmp.lt.s32.totalorder %s1315_s23, 2  ;;  %s198_s6 = sand.u32 1, %s1303_s20  }
   0xb   : > { %p1394_p7 = por %p53_p5, %p52_p4  ;;  %s1137_s7 = sshll.u32 %s1311_s22, 8 }
   0xc   : > { %s1400_s30 = scalar_select %p37_p6, %s1303_s20, %s39_s26  }
   0xd   : > { %s1110_s8 = sshll.u32 %s198_s6, 8  ;;  %s209_s11 = scalar_lea.hbm %s1599_s0, %s1137_s7 }
   0xe   : > { %s210_s12 = sshll.u32 %s209_s11, 4  ;;  %s202_s13 = scalar_lea.vmem [#allocation4], %s1110_s8  ;;  %s211_s12 = int_to_ptr.hbm [resolvable:$true] %s210_s12 }
   0xf   : > { %s212_s14 = sshll.u32 %s202_s13, 4  ;;  %p1144_p9 = pnand %p1147_p8, %p1387_p3  ;;  %s213_s14 = int_to_ptr.vmem [resolvable:$true] %s212_s14 }
  0x10   : > { %p1113_p10 = scmp.ge.s32.totalorder %s1315_s23, 1  ;;  %p220_p11 = scmp.lt.s32.totalorder %s1315_s23, 3 }
  0x11   : > { %s199_s15 = scalar_lea.sflag [#allocation5], %s198_s6  ;;  %s1317_s16 = smov 512  }
  0x12   : > { %s1318_s17 = smov 32   ;;  %p221_p12 = pnand %p1113_p10, %p220_p11 }
  0x13   : > { %1146 = dma.hbm_to_vmem [thread:$0]  (!%p1144_p9), %s211_s12, 4096, %s213_s14, %s199_s15, %s1317_s16, %s1317_s16, %s1318_s17  }
  0x14   : > { %224 = sbr.rel (%p221_p12) target bundleno = 620 (0x26c), region = 40  ;;  %s226_s18 = sand.u32 (!%p221_p12), 1, %s1299_s19  }
  0x15   : > { %s1114_s24 = sshll.u32 (!%p221_p12), %s226_s18, 8  ;;  %s227_s26 = scalar_lea.sflag (!%p221_p12), [#allocation5], %s226_s18 }
  0x16   : > { %s1412_s28 = scalar_lea.vmem (!%p221_p12), [#allocation4], %s1114_s24 }
  0x19   : > { %1290 = dma.done.wait (%p1394_p7), %s227_s26, 4096  }
  0x1a   : > { %1292 = vsyncadd (%p1394_p7), %s227_s26, 4294963200  ;;  %v452_v0 = vlaneseq  ;;  %v442_v3 = vld [vmem:[%s1412_s28 + $0xe0] sm:$0xff]  ;;  %v482_v4 = vld [vmem:[%s1412_s28 + $0xe8] sm:$0xff]  ;;  %vm661_vm1 = vcmask 7168   ;;  %vm677_vm2 = vcmask 523264   ;;  %vm783_vm3 = vcmask 1043456  }
  0x1b   : > { %v520_v5 = vld [vmem:[%s1412_s28 + $0xf0] sm:$0xff]  ;;  %v512_v6 = vmax.f32 %v442_v3, %v482_v4  ;;  %v558_v7 = vld [vmem:[%s1412_s28 + $0xf8] sm:$0xff]  ;;  %v490_v8 = vadd.f32 %v482_v4, %v442_v3  ;;  %v441_v9 = vld [vmem:[%s1412_s28 + $0xc0] sm:$0xff]  ;;  %vm758_vm4 = vcmask 31744   ;;  %s1320_s27 = smov 127   ;;  %p259_p13 = scmp.lt.s32.totalorder %s1307_s21, 1 }
  0x1c   : > { %v453_v1 = vand.u32 127, %v452_v0  ;;  %v481_v10 = vld [vmem:[%s1412_s28 + $0xc8] sm:$0xff]  ;;  %v519_v13 = vld [vmem:[%s1412_s28 + $0xd0] sm:$0xff]  ;;  %v557_v14 = vld [vmem:[%s1412_s28 + $0xd8] sm:$0xff] }
  0x1d   : > { %v511_v12 = vmax.f32 %v441_v9, %v481_v10  ;;  %v440_v15 = vld [vmem:[%s1412_s28 + $0xa0] sm:$0xff]  ;;  %v550_v16 = vmax.f32 %v512_v6, %v520_v5  ;;  %v528_v17 = vadd.f32 %v520_v5, %v490_v8  ;;  %v489_v19 = vadd.f32 %v481_v10, %v441_v9  ;;  %v480_v20 = vld [vmem:[%s1412_s28 + $0xa8] sm:$0xff]  ;;  %v518_v23 = vld [vmem:[%s1412_s28 + $0xb0] sm:$0xff]  ;;  %s1615_s21 = smov (!%p259_p13, %s1307_s21), 1 }
  0x1e   : > { %v1418_v2 = vadd.s32 384, %v453_v1  ;;  %v488_v22 = vadd.f32 %v480_v20, %v440_v15  ;;  %v439_v24 = vld [vmem:[%s1412_s28 + $0x80] sm:$0xff]  ;;  %v479_v25 = vld [vmem:[%s1412_s28 + $0x88] sm:$0xff]  ;;  %v517_v29 = vld [vmem:[%s1412_s28 + $0x90] sm:$0xff]  ;;  %v510_v40 = vmax.f32 %v440_v15, %v480_v20  ;;  %s1138_s29 = sshll.u32 %s1615_s21, 6 }
  0x1f   : > { %v549_v21 = vmax.f32 %v511_v12, %v519_v13  ;;  %v566_v27 = vadd.f32 %v558_v7, %v528_v17  ;;  %v487_v28 = vadd.f32 %v479_v25, %v439_v24  ;;  %v527_v31 = vadd.f32 %v519_v13, %v489_v19  ;;  %v556_v33 = vld [vmem:[%s1412_s28 + $0xb8] sm:$0xff]  ;;  %v438_v35 = vld [vmem:[%s1412_s28 + $0x60] sm:$0xff]  ;;  %v478_v36 = vld [vmem:[%s1412_s28 + $0x68] sm:$0xff]  ;;  %s1553_s8 = scalar_lea.vmem %s1604_s5, %s1138_s29 }
  0x20   : > { %vm570_vm0 = vcmp.lt.s32.totalorder %v1418_v2, 500  ;;  %v526_v32 = vadd.f32 %v518_v23, %v488_v22  ;;  %v555_v37 = vld [vmem:[%s1412_s28 + $0x98] sm:$0xff]  ;;  %v486_v41 = vadd.f32 %v478_v36, %v438_v35  ;;  %v509_v43 = vmax.f32 %v439_v24, %v479_v25  ;;  %v516_v44 = vld [vmem:[%s1412_s28 + $0x70] sm:$0xff]  ;;  %v437_v50 = vld [vmem:[%s1412_s28 + $0x40] sm:$0xff] }
  0x21   : > { %v580_v11 = vsel %vm570_vm0, %v558_v7, -inf  ;;  %v579_v18 = vsel %vm570_vm0, %v557_v14, -inf  ;;  %627 = vadd.xlane.f32.xlu0 %v566_v27  ;;  %v525_v34 = vadd.f32 %v517_v29, %v487_v28  ;;  %v565_v38 = vadd.f32 %v557_v14, %v527_v31  ;;  %v554_v49 = vld [vmem:[%s1412_s28 + $0x78] sm:$0xff]  ;;  %v477_v51 = vld [vmem:[%s1412_s28 + $0x48] sm:$0xff]  ;;  %v436_v53 = vld [vmem:[%s1412_s28 + $0x20] sm:$0xff] }
  0x22   : > { %v588_v26 = vmax.f32 %v550_v16, %v580_v11  ;;  %v587_v30 = vmax.f32 %v549_v21, %v579_v18  ;;  %v564_v39 = vadd.f32 %v556_v33, %v526_v32  ;;  %v548_v45 = vmax.f32 %v510_v40, %v518_v23  ;;  %v476_v54 = vld [vmem:[%s1412_s28 + $0x28] sm:$0xff]  ;;  %v515_v60 = vld [vmem:[%s1412_s28 + $0x50] sm:$0xff]  ;;  %v553_v3 = vld [vmem:[%s1412_s28 + $0x58] sm:$0xff] }
  0x23   : > { %v563_v42 = vadd.f32 %v555_v37, %v525_v34  ;;  %v524_v46 = vadd.f32 %v516_v44, %v486_v41  ;;  %v578_v47 = vsel %vm570_vm0, %v556_v33, -inf  ;;  %v547_v48 = vmax.f32 %v509_v43, %v517_v29  ;;  %v514_v62 = vld [vmem:[%s1412_s28 + $0x30] sm:$0xff]  ;;  %v435_v5 = vld [vmem:[%s1412_s28] sm:$0xff]  ;;  %v475_v6 = vld [vmem:[%s1412_s28 + $0x8] sm:$0xff] }
  0x24   : > { %651 = vmax.xlane.f32.xlu1 %v588_v26  ;;  %649 = vmax.xlane.f32.xlu2 %v587_v30  ;;  %v577_v52 = vsel %vm570_vm0, %v555_v37, -inf  ;;  %v586_v55 = vmax.f32 %v548_v45, %v578_v47  ;;  %v508_v57 = vmax.f32 %v438_v35, %v478_v36  ;;  %v485_v58 = vadd.f32 %v477_v51, %v437_v50  ;;  %v552_v7 = vld [vmem:[%s1412_s28 + $0x38] sm:$0xff]  ;;  %v513_v14 = vld [vmem:[%s1412_s28 + $0x10] sm:$0xff]  ;;  %v671_v28 = vld [vmem:[%s1601_s2] sm:$0xf] }
  0x25   : > { %v562_v56 = vadd.f32 %v554_v49, %v524_v46  ;;  %v585_v59 = vmax.f32 %v547_v48, %v577_v52  ;;  %v484_v61 = vadd.f32 %v476_v54, %v436_v53  ;;  %v576_v1 = vsel %vm570_vm0, %v554_v49, -inf  ;;  %v551_v19 = vld [vmem:[%s1412_s28 + $0x18] sm:$0xff]  ;;  %v715_v40 = vld [vmem:[%s1603_s4 + $0x28] sm:$0xff] }
  0x26   : > { %v546_v63 = vmax.f32 %v508_v57, %v516_v44  ;;  %v523_v0 = vadd.f32 %v515_v60, %v485_v58  ;;  %v507_v10 = vmax.f32 %v437_v50, %v477_v51  ;;  %v483_v11 = vadd.f32 %v475_v6, %v435_v5  ;;  %v713_v2 = vld [vmem:[%s1603_s4 + $0x18] sm:$0xff] }
  0x27   : > { %v522_v4 = vadd.f32 %v514_v62, %v484_v61  ;;  %v506_v13 = vmax.f32 %v436_v53, %v476_v54  ;;  %v575_v17 = vsel %vm570_vm0, %v553_v3, -inf  ;;  %v574_v20 = vsel %vm570_vm0, %v552_v7, -inf  ;;  %v717_v47 = vld [vmem:[%s1603_s4 + $0x38] sm:$0xff] }
  0x28   : > { %v584_v8 = vmax.f32 %v546_v63, %v576_v1  ;;  %v561_v9 = vadd.f32 %v553_v3, %v523_v0  ;;  %v545_v15 = vmax.f32 %v507_v10, %v515_v60  ;;  %v521_v16 = vadd.f32 %v513_v14, %v483_v11  ;;  %v670_v63 = vld [vmem:[%s1600_s1] sm:$0xf]  ;;  %v712_v3 = vld [vmem:[%s1603_s4 + $0x10] sm:$0xff]  ;;  %v705_v11 = vld [vmem:[%s1602_s3 + $0x18] sm:$0xff] }
  0x29   : > { %625 = vadd.xlane.f32.xlu0 %v565_v38  ;;  %v560_v12 = vadd.f32 %v552_v7, %v522_v4  ;;  %v544_v18 = vmax.f32 %v506_v13, %v514_v62  ;;  %v505_v23 = vmax.f32 %v435_v5, %v475_v6  ;;  %v573_v26 = vsel %vm570_vm0, %v551_v19, -inf  ;;  %v710_v1 = vld [vmem:[%s1603_s4] sm:$0xff]  ;;  %v711_v4 = vld [vmem:[%s1603_s4 + $0x8] sm:$0xff]  ;;  %v716_v13 = vld [vmem:[%s1603_s4 + $0x30] sm:$0xff] }
  0x2a   : > { %v583_v21 = vmax.f32 %v545_v15, %v575_v17  ;;  %v559_v22 = vadd.f32 %v551_v19, %v521_v16  ;;  %v1319_v29 = vmov 0   ;;  %v714_v5 = vld [vmem:[%s1603_s4 + $0x20] sm:$0xff]  ;;  %v709_v16 = vld [vmem:[%s1602_s3 + $0x38] sm:$0xff]  ;;  %v704_v17 = vld [vmem:[%s1602_s3 + $0x10] sm:$0xff] }
  0x2b   : > { %v582_v24 = vmax.f32 %v544_v18, %v574_v20  ;;  %v543_v25 = vmax.f32 %v505_v23, %v513_v14  ;;  %1200 = vset.pattern.permute.xlu1 %v1319_v29  ;;  %1201 = vset.pattern.permute.xlu2 %v1319_v29  ;;  %v702_v10 = vld [vmem:[%s1602_s3] sm:$0xff]  ;;  %v703_v14 = vld [vmem:[%s1602_s3 + $0x8] sm:$0xff] }
  0x2c   : > { %623 = vadd.xlane.f32.xlu1 %v564_v39  ;;  %621 = vadd.xlane.f32.xlu2 %v563_v42  ;;  %v706_v15 = vld [vmem:[%s1602_s3 + $0x20] sm:$0xff]  ;;  %v707_v18 = vld [vmem:[%s1602_s3 + $0x28] sm:$0xff] }
  0x2d   : > { %v581_v27 = vmax.f32 %v543_v25, %v573_v26  ;;  %1202 = vset.pattern.permute.xlu0 %v1319_v29 }
  0x31   : > { %647 = vmax.xlane.f32.xlu0 %v586_v55 }
  0x34   : > { %619 = vadd.xlane.f32.xlu1 %v562_v56  ;;  %645 = vmax.xlane.f32.xlu2 %v585_v59 }
  0x39   : > { %617 = vadd.xlane.f32.xlu0 %v561_v9 }
  0x3c   : > { %643 = vmax.xlane.f32.xlu1 %v584_v8  ;;  %615 = vadd.xlane.f32.xlu2 %v560_v12  ;;  %v708_v12 = vld [vmem:[%s1602_s3 + $0x30] sm:$0xff] }
  0x41   : > { %641 = vmax.xlane.f32.xlu0 %v583_v21 }
  0x44   : > { %613 = vadd.xlane.f32.xlu1 %v559_v22  ;;  %639 = vmax.xlane.f32.xlu2 %v582_v24 }
  0x49   : > { %637 = vmax.xlane.f32.xlu0 %v581_v27 }
  0x5c   : > { %720 = vperm.xlu2 %1201, %v710_v1  }
  0x5d   : > { %674 = vperm.xlu1 %1200, %v671_v28   ;;  %725 = vperm.xlu0 %1202, %v711_v4  }
  0x64   : > { %730 = vperm.xlu2 %1201, %v712_v3  }
  0x65   : > { %735 = vperm.xlu1 %1200, %v713_v2  }
  0x6c   : > { %740 = vperm.xlu2 %1201, %v714_v5  }
  0x6d   : > { %745 = vperm.xlu1 %1200, %v715_v40  }
  0x74   : > { %750 = vperm.xlu2 %1201, %v716_v13  }
  0x75   : > { %755 = vperm.xlu1 %1200, %v717_v47  }
  0x94   : > { %v628_v31 = vpop.xlane.xlu0 %627 }
  0x95   : > { %v660_v32 = vmul.f32 0.002, %v628_v31 }
  0x97   : > { %v652_v30 = vpop.xlane.xlu1 %651  ;;  %v650_v33 = vpop.xlane.xlu2 %649 }
  0x98   : > { %v669_v34 = vsel %vm661_vm1, %v660_v32, %v652_v30 }
  0x99   : > { %689 = vmatpush.msra.mxu0 %v669_v34 }
  0x9c   : > { %v626_v35 = vpop.xlane.xlu0 %625 }
  0x9d   : > { %v659_v37 = vmul.f32 0.002, %v626_v35 }
  0x9f   : > { %v624_v36 = vpop.xlane.xlu1 %623  ;;  %v622_v38 = vpop.xlane.xlu2 %621  ;;  %v668_v39 = vsel %vm661_vm1, %v659_v37, %v650_v33 }
  0xa0   : > { %690 = vmatpush.msra.mxu0 %v668_v39  ;;  %v658_v41 = vmul.f32 0.002, %v624_v36  ;;  %v657_v42 = vmul.f32 0.002, %v622_v38 }
  0xa4   : > { %v648_v43 = vpop.xlane.xlu0 %647 }
  0xa5   : > { %v667_v46 = vsel %vm661_vm1, %v658_v41, %v648_v43 }
  0xa6   : > { %691 = vmatpush.msra.mxu0 %v667_v46 }
  0xa7   : > { %v620_v44 = vpop.xlane.xlu1 %619  ;;  %v646_v45 = vpop.xlane.xlu2 %645 }
  0xa8   : > { %v666_v48 = vsel %vm661_vm1, %v657_v42, %v646_v45  ;;  %v656_v49 = vmul.f32 0.002, %v620_v44 }
  0xa9   : > { %692 = vmatpush.msra.mxu0 %v666_v48 }
  0xac   : > { %v618_v51 = vpop.xlane.xlu0 %617 }
  0xad   : > { %v655_v54 = vmul.f32 0.002, %v618_v51 }
  0xaf   : > { %v644_v50 = vpop.xlane.xlu1 %643  ;;  %v616_v52 = vpop.xlane.xlu2 %615 }
  0xb0   : > { %v665_v53 = vsel %vm661_vm1, %v656_v49, %v644_v50  ;;  %v654_v55 = vmul.f32 0.002, %v616_v52 }
  0xb1   : > { %693 = vmatpush.msra.mxu0 %v665_v53 }
  0xb4   : > { %v642_v56 = vpop.xlane.xlu0 %641 }
  0xb5   : > { %v664_v58 = vsel %vm661_vm1, %v655_v54, %v642_v56 }
  0xb6   : > { %694 = vmatpush.msra.mxu0 %v664_v58 }
  0xb7   : > { %v640_v57 = vpop.xlane.xlu2 %639  ;;  %v614_v59 = vpop.xlane.xlu1 %613 }
  0xb8   : > { %v663_v60 = vsel %vm661_vm1, %v654_v55, %v640_v57  ;;  %v653_v61 = vmul.f32 0.002, %v614_v59 }
  0xb9   : > { %695 = vmatpush.msra.mxu0 %v663_v60 }
  0xbc   : > { %v638_v62 = vpop.xlane.xlu0 %637 }
  0xbd   : > { %v662_v0 = vsel %vm661_vm1, %v653_v61, %v638_v62 }
  0xbe   : > { %696 = vmatpush.msra.mxu0 %v662_v0 }
  0xbf   : > { %1117 = vmatmul.msk.f32.vlgmr.msra.gmra.mxu0 %vm677_vm2, %v670_v63  ;;  %v721_v19 = vpop.permute.xlu2 %720 }
  0xc7   : > { %v731_v20 = vpop.permute.xlu2 %730 }
  0xcf   : > { %v675_v6 = vpop.permute.xlu1 %674  ;;  %v726_v24 = vpop.permute.xlu0 %725 }
  0xd0   : > { %v741_v25 = vpop.permute.xlu2 %740 }
  0xd7   : > { %v736_v23 = vpop.permute.xlu1 %735 }
  0xd8   : > { %v751_v34 = vpop.permute.xlu2 %750 }
  0xdf   : > { %v746_v31 = vpop.permute.xlu1 %745 }
  0xe7   : > { %v756_v39 = vpop.permute.xlu1 %755 }
 0x13c   : > { %v698_v7 = vpop.f32.mrf.mxu0 }
 0x13d   : > { %v699_v8 = vadd.f32 %v698_v7, %v675_v6 }
 0x13f   : > { %v701_v9 = vmax.f32 %v699_v8, 0.0 }
 0x141   : > { %1118 = vmatpush.msk.msra.mxu1 %vm783_vm3, %v701_v9  ;;  %1139 = vmatpush.msk.msra.mxu2 %vm783_vm3, %v701_v9 }
 0x142   : > { %1140 = vmatpush.msk.msra.mxu3 %vm783_vm3, %v701_v9  ;;  %1119 = vmatmul.msk.f32.vlgmr.msra.gmra.mxu1 %vm758_vm4, %v702_v10 }
 0x143   : > { %1122 = vmatmul.msk.f32.vlgmr.msra.gmra.mxu2 %vm758_vm4, %v705_v11  ;;  %1125 = vmatmul.msk.f32.vlgmr.msra.gmra.mxu3 %vm758_vm4, %v708_v12 }
 0x14a   : > { %1120 = vmatmul.msk.f32.gmra.mxu1 %vm758_vm4, %v703_v14 }
 0x14b   : > { %1123 = vmatmul.msk.f32.gmra.mxu2 %vm758_vm4, %v706_v15  ;;  %1126 = vmatmul.msk.f32.gmra.mxu3 %vm758_vm4, %v709_v16 }
 0x152   : > { %1121 = vmatmul.msk.f32.gmra.mxu1 %vm758_vm4, %v704_v17 }
 0x153   : > { %1124 = vmatmul.msk.f32.gmra.mxu2 %vm758_vm4, %v707_v18 }
 0x1bf   : > { %v804_v21 = vpop.f32.mrf.mxu1 }
 0x1c0   : > { %v805_v22 = vadd.f32 %v804_v21, %v721_v19 }
 0x1c2   : > { %836 = vrot.lane.b32.xlu0 %v805_v22, %s1320_s27 }
 0x1c6   : > { %v813_v26 = vpop.f32.mrf.mxu2  ;;  %v822_v30 = vpop.f32.mrf.mxu3 }
 0x1c7   : > { %v807_v27 = vpop.f32.mrf.mxu1  ;;  %v814_v28 = vadd.f32 %v813_v26, %v736_v23  ;;  %v1541_v36 = vadd.f32 %v822_v30, %v751_v34 }
 0x1c8   : > { %v808_v29 = vadd.f32 %v807_v27, %v726_v24 }
 0x1ca   : > { %838 = vrot.lane.b32.xlu2 %v808_v29, %s1320_s27  ;;  %842 = vrot.lane.b32.xlu0 %v814_v28, %s1320_s27 }
 0x1ce   : > { %v816_v32 = vpop.f32.mrf.mxu2  ;;  %v825_v37 = vpop.f32.mrf.mxu3 }
 0x1cf   : > { %v810_v33 = vpop.f32.mrf.mxu1  ;;  %v817_v2 = vadd.f32 %v816_v32, %v741_v25  ;;  %v826_v40 = vadd.f32 %v825_v37, %v756_v39 }
 0x1d0   : > { %v1539_v35 = vadd.f32 %v810_v33, %v731_v20 }
 0x1d2   : > { %840 = vrot.lane.b32.xlu1 %v1539_v35, %s1320_s27  ;;  %844 = vrot.lane.b32.xlu2 %v817_v2, %s1320_s27 }
 0x1d3   : > { %848 = vrot.lane.b32.xlu0 %v1541_v36, %s1320_s27 }
 0x1d6   : > { %v819_v38 = vpop.f32.mrf.mxu2 }
 0x1d7   : > { %v1545_v41 = vadd.f32 %v819_v38, %v746_v31 }
 0x1da   : > { %846 = vrot.lane.b32.xlu1 %v1545_v41, %s1320_s27  ;;  %850 = vrot.lane.b32.xlu2 %v826_v40, %s1320_s27 }
 0x224   : > { %v839_v42 = vpop.permute.xlu2 %838 }
 0x225   : > { %v861_v43 = vadd.f32 %v839_v42, %v808_v29 }
 0x227   : > { %v1128_v44 = vmul.f32 -1.442695, %v861_v43 }
 0x229   : > { %1203 = vpow2.f32 %v1128_v44 }
 0x22c   : > { %v845_v45 = vpop.permute.xlu2 %844 }
 0x22d   : > { %v864_v46 = vadd.f32 %v845_v45, %v817_v2 }
 0x22f   : > { %v1204_v47 = vpop.eup %1203  ;;  %v1131_v48 = vmul.f32 -1.442695, %v864_v46 }
 0x230   : > { %v893_v49 = vadd.f32 1.0, %v1204_v47 }
 0x231   : > { %1205 = vpow2.f32 %v1131_v48 }
 0x232   : > { %1207 = vrcp.f32 %v893_v49  ;;  %v926_v61 = vand.u32 2147483648, %v893_v49  ;;  %v924_v0 = vand.u32 2147483647, %v893_v49  ;;  %vm920_vm6 = vweird.f32 %v893_v49 }
 0x234   : > { %v837_v50 = vpop.permute.xlu0 %836  ;;  %v851_v51 = vpop.permute.xlu2 %850  ;;  %v927_v7 = vor.u32 1.1754944e-38, %v926_v61  ;;  %vm925_vm8 = vcmp.eq.f32.partialorder %v924_v0, 8.507059e+37 }
 0x235   : > { %v860_v52 = vadd.f32 %v837_v50, %v805_v22  ;;  %v867_v53 = vadd.f32 %v851_v51, %v826_v40 }
 0x237   : > { %v1206_v54 = vpop.eup %1205  ;;  %v1127_v55 = vmul.f32 -1.442695, %v860_v52  ;;  %v1134_v56 = vmul.f32 -1.442695, %v867_v53 }
 0x238   : > { %v1208_v57 = vpop.eup %1207  ;;  %v896_v58 = vadd.f32 1.0, %v1206_v54 }
 0x239   : > { %v916_v59 = vmul.f32 %v1208_v57, %v893_v49  ;;  %1209 = vpow2.f32 %v1127_v55  ;;  %vm921_vm5 = vweird.f32 %v1208_v57 }
 0x23a   : > { %1211 = vrcp.f32 %v896_v58  ;;  %vm922_vm7 = vmor %vm920_vm6, %vm921_vm5  ;;  %v971_v15 = vand.u32 2147483648, %v896_v58  ;;  %v969_v18 = vand.u32 2147483647, %v896_v58  ;;  %vm965_vm10 = vweird.f32 %v896_v58 }
 0x23b   : > { %v917_v60 = vsub.f32 1.0, %v916_v59  ;;  %1213 = vpow2.f32 %v1134_v56 }
 0x23c   : > { %v843_v62 = vpop.permute.xlu0 %842  ;;  %v972_v25 = vor.u32 1.1754944e-38, %v971_v15  ;;  %vm970_vm12 = vcmp.eq.f32.partialorder %v969_v18, 8.507059e+37 }
 0x23d   : > { %v918_v63 = vmul.f32 %v1208_v57, %v917_v60  ;;  %v863_v1 = vadd.f32 %v843_v62, %v814_v28 }
 0x23f   : > { %v1210_v3 = vpop.eup %1209  ;;  %v919_v4 = vadd.f32 %v1208_v57, %v918_v63  ;;  %v1130_v5 = vmul.f32 -1.442695, %v863_v1 }
 0x240   : > { %v1212_v6 = vpop.eup %1211  ;;  %v892_v8 = vadd.f32 1.0, %v1210_v3 }
 0x241   : > { %v1214_v9 = vpop.eup %1213  ;;  %v923_v10 = vsel %vm922_vm7, %v1208_v57, %v919_v4  ;;  %v961_v11 = vmul.f32 %v1212_v6, %v896_v58  ;;  %1215 = vpow2.f32 %v1130_v5  ;;  %vm966_vm9 = vweird.f32 %v1212_v6 }
 0x242   : > { %v928_v12 = vsel %vm925_vm8, %v927_v7, %v923_v10  ;;  %1217 = vrcp.f32 %v892_v8  ;;  %v899_v14 = vadd.f32 1.0, %v1214_v9  ;;  %vm967_vm11 = vmor %vm965_vm10, %vm966_vm9  ;;  %v911_v34 = vand.u32 2147483648, %v892_v8 }
 0x243   : > { %1021 = vst.msk [vmem:[%s1553_s8 + $0x8] sm:$0xff] %vm661_vm1, %v928_v12  ;;  %v962_v13 = vsub.f32 1.0, %v961_v11  ;;  %v909_v37 = vand.u32 2147483647, %v892_v8  ;;  %vm905_vm14 = vweird.f32 %v892_v8 }
 0x244   : > { %v841_v16 = vpop.permute.xlu1 %840  ;;  %1219 = vrcp.f32 %v899_v14  ;;  %v1014_v42 = vand.u32 2147483647, %v899_v14  ;;  %v1016_v43 = vand.u32 2147483648, %v899_v14  ;;  %v912_v46 = vor.u32 1.1754944e-38, %v911_v34 }
 0x245   : > { %v963_v17 = vmul.f32 %v1212_v6, %v962_v13  ;;  %v849_v19 = vpop.permute.xlu0 %848  ;;  %v862_v21 = vadd.f32 %v841_v16, %v1539_v35  ;;  %vm910_vm2 = vcmp.eq.f32.partialorder %v909_v37, 8.507059e+37  ;;  %vm1010_vm3 = vweird.f32 %v899_v14 }
 0x246   : > { %v866_v20 = vadd.f32 %v849_v19, %v1541_v36  ;;  %vm1015_vm5 = vcmp.eq.f32.partialorder %v1014_v42, 8.507059e+37  ;;  %v1017_v54 = vor.u32 1.1754944e-38, %v1016_v43 }
 0x247   : > { %v1216_v22 = vpop.eup %1215  ;;  %v964_v23 = vadd.f32 %v1212_v6, %v963_v17  ;;  %v1129_v30 = vmul.f32 -1.442695, %v862_v21 }
 0x248   : > { %v1218_v24 = vpop.eup %1217  ;;  %v1559_v26 = vadd.f32 1.0, %v1216_v22  ;;  %v1133_v27 = vmul.f32 -1.442695, %v866_v20 }
 0x249   : > { %v968_v28 = vsel %vm967_vm11, %v1212_v6, %v964_v23  ;;  %v901_v29 = vmul.f32 %v1218_v24, %v892_v8  ;;  %vm906_vm13 = vweird.f32 %v1218_v24 }
 0x24a   : > { %v973_v31 = vsel %vm970_vm12, %v972_v25, %v968_v28  ;;  %1221 = vrcp.f32 %v1559_v26  ;;  %v1220_v32 = vpop.eup %1219  ;;  %vm907_vm15 = vmor %vm905_vm14, %vm906_vm13  ;;  %v954_v58 = vand.u32 2147483647, %v1559_v26  ;;  %v956_v59 = vand.u32 2147483648, %v1559_v26 }
 0x24b   : > { %1024 = vst.msk [vmem:[%s1553_s8 + $0x20] sm:$0xff] %vm661_vm1, %v973_v31  ;;  %v902_v33 = vsub.f32 1.0, %v901_v29  ;;  %1223 = vpow2.f32 %v1133_v27  ;;  %v1006_v2 = vmul.f32 %v1220_v32, %v899_v14  ;;  %vm1011_vm0 = vweird.f32 %v1220_v32 }
 0x24c   : > { %1225 = vpow2.f32 %v1129_v30  ;;  %v847_v35 = vpop.permute.xlu1 %846  ;;  %vm1012_vm4 = vmor %vm1010_vm3, %vm1011_vm0  ;;  %vm950_vm7 = vweird.f32 %v1559_v26  ;;  %v957_v0 = vor.u32 1.1754944e-38, %v956_v59  ;;  %vm955_vm9 = vcmp.eq.f32.partialorder %v954_v58, 8.507059e+37 }
 0x24d   : > { %v903_v36 = vmul.f32 %v1218_v24, %v902_v33  ;;  %v865_v38 = vadd.f32 %v847_v35, %v1545_v41  ;;  %v1007_v39 = vsub.f32 1.0, %v1006_v2 }
 0x24f   : > { %v904_v40 = vadd.f32 %v1218_v24, %v903_v36  ;;  %v1132_v44 = vmul.f32 -1.442695, %v865_v38  ;;  %v1008_v47 = vmul.f32 %v1220_v32, %v1007_v39 }
 0x250   : > { %v1222_v45 = vpop.eup %1221 }
 0x251   : > { %v1224_v48 = vpop.eup %1223  ;;  %v908_v49 = vsel %vm907_vm15, %v1218_v24, %v904_v40  ;;  %v946_v50 = vmul.f32 %v1222_v45, %v1559_v26  ;;  %1227 = vpow2.f32 %v1132_v44  ;;  %v1009_v52 = vadd.f32 %v1220_v32, %v1008_v47 }
 0x252   : > { %v1226_v51 = vpop.eup %1225  ;;  %v913_v41 = vsel %vm910_vm2, %v912_v46, %v908_v49  ;;  %v898_v53 = vadd.f32 1.0, %v1224_v48  ;;  %vm951_vm6 = vweird.f32 %v1222_v45 }
 0x253   : > { %1020 = vst.msk [vmem:[%s1553_s8] sm:$0xff] %vm661_vm1, %v913_v41  ;;  %v947_v55 = vsub.f32 1.0, %v946_v50  ;;  %v894_v56 = vadd.f32 1.0, %v1226_v51  ;;  %v1013_v57 = vsel %vm1012_vm4, %v1220_v32, %v1009_v52  ;;  %vm952_vm8 = vmor %vm950_vm7, %vm951_vm6 }
 0x254   : > { %1229 = vrcp.f32 %v898_v53  ;;  %v1018_v60 = vsel %vm1015_vm5, %v1017_v54, %v1013_v57  ;;  %v1001_v10 = vand.u32 2147483648, %v898_v53  ;;  %v999_v13 = vand.u32 2147483647, %v898_v53 }
 0x255   : > { %v948_v61 = vmul.f32 %v1222_v45, %v947_v55  ;;  %1231 = vrcp.f32 %v894_v56  ;;  %1027 = vst.msk [vmem:[%s1553_s8 + $0x38] sm:$0xff] %vm661_vm1, %v1018_v60  ;;  %v941_v14 = vand.u32 2147483648, %v894_v56  ;;  %v939_v17 = vand.u32 2147483647, %v894_v56 }
 0x256   : > { %vm995_vm12 = vweird.f32 %v898_v53  ;;  %v1002_v20 = vor.u32 1.1754944e-38, %v1001_v10  ;;  %vm935_vm14 = vweird.f32 %v894_v56  ;;  %vm1000_vm15 = vcmp.eq.f32.partialorder %v999_v13, 8.507059e+37 }
 0x257   : > { %v1228_v62 = vpop.eup %1227  ;;  %v949_v63 = vadd.f32 %v1222_v45, %v948_v61  ;;  %v942_v23 = vor.u32 1.1754944e-38, %v941_v14  ;;  %vm940_vm2 = vcmp.eq.f32.partialorder %v939_v17, 8.507059e+37 }
 0x258   : > { %v897_v1 = vadd.f32 1.0, %v1228_v62 }
 0x259   : > { %v953_v3 = vsel %vm952_vm8, %v1222_v45, %v949_v63 }
 0x25a   : > { %v1230_v4 = vpop.eup %1229  ;;  %v958_v5 = vsel %vm955_vm9, %v957_v0, %v953_v3  ;;  %1233 = vrcp.f32 %v897_v1  ;;  %v986_v27 = vand.u32 2147483648, %v897_v1  ;;  %v984_v30 = vand.u32 2147483647, %v897_v1 }
 0x25b   : > { %v1232_v6 = vpop.eup %1231  ;;  %1023 = vst.msk [vmem:[%s1553_s8 + $0x18] sm:$0xff] %vm661_vm1, %v958_v5  ;;  %v991_v7 = vmul.f32 %v1230_v4, %v898_v53  ;;  %vm996_vm10 = vweird.f32 %v1230_v4  ;;  %vm980_vm4 = vweird.f32 %v897_v1 }
 0x25c   : > { %v931_v8 = vmul.f32 %v1232_v6, %v894_v56  ;;  %vm936_vm11 = vweird.f32 %v1232_v6  ;;  %vm997_vm13 = vmor %vm995_vm12, %vm996_vm10  ;;  %v987_v32 = vor.u32 1.1754944e-38, %v986_v27  ;;  %vm985_vm6 = vcmp.eq.f32.partialorder %v984_v30, 8.507059e+37 }
 0x25d   : > { %v992_v9 = vsub.f32 1.0, %v991_v7  ;;  %vm937_vm0 = vmor %vm935_vm14, %vm936_vm11 }
 0x25e   : > { %v932_v11 = vsub.f32 1.0, %v931_v8 }
 0x25f   : > { %v993_v12 = vmul.f32 %v1230_v4, %v992_v9 }
 0x260   : > { %v1234_v15 = vpop.eup %1233  ;;  %v933_v16 = vmul.f32 %v1232_v6, %v932_v11 }
 0x261   : > { %v994_v18 = vadd.f32 %v1230_v4, %v993_v12  ;;  %v976_v19 = vmul.f32 %v1234_v15, %v897_v1  ;;  %vm981_vm3 = vweird.f32 %v1234_v15 }
 0x262   : > { %v934_v21 = vadd.f32 %v1232_v6, %v933_v16  ;;  %vm982_vm5 = vmor %vm980_vm4, %vm981_vm3 }
 0x263   : > { %v998_v22 = vsel %vm997_vm13, %v1230_v4, %v994_v18  ;;  %v977_v24 = vsub.f32 1.0, %v976_v19 }
 0x264   : > { %v1003_v25 = vsel %vm1000_vm15, %v1002_v20, %v998_v22  ;;  %v938_v26 = vsel %vm937_vm0, %v1232_v6, %v934_v21 }
 0x265   : > { %1026 = vst.msk [vmem:[%s1553_s8 + $0x30] sm:$0xff] %vm661_vm1, %v1003_v25  ;;  %v943_v28 = vsel %vm940_vm2, %v942_v23, %v938_v26  ;;  %v978_v29 = vmul.f32 %v1234_v15, %v977_v24 }
 0x266   : > { %1022 = vst.msk [vmem:[%s1553_s8 + $0x10] sm:$0xff] %vm661_vm1, %v943_v28 }
 0x267   : > { %v979_v31 = vadd.f32 %v1234_v15, %v978_v29 }
 0x269   : > { %v983_v33 = vsel %vm982_vm5, %v1234_v15, %v979_v31 }
 0x26a   : > { %v988_v34 = vsel %vm985_vm6, %v987_v32, %v983_v33 }
 0x26b   : > { %1025 = vst.msk [vmem:[%s1553_s8 + $0x28] sm:$0xff] %vm661_vm1, %v988_v34 }
 0x26c PF: > { %s18_s23 = sadd.s32 1, %s1315_s23   ;;  %s1607_s18 = smov %s1299_s19 }
 0x26d   : > { %p15_p0 = scmp.ge.s32.totalorder %s18_s23, 4   ;;  %s1608_s19 = smov %s1303_s20 }
 0x26e   : > { %s1609_s20 = smov %s1400_s30  ;;  %s1610_s21 = smov %s1311_s22 }
 0x26f   : > { %s1611_s22 = smov %s1613_s25  ;;  %17 = sbr.rel (!%p15_p0) target bundleno = 4 (0x4), region = 92 }
 0x274   :  { %1049 = vsyncpa [#allocation5], 1 }
 0x275   :  { %1051 = vsyncpa [#allocation5 + $0x1], 1 }

</bundles_post_ra>
